<compile_context>
chip_gen: v6e
topology: v6e:2x2x1
jax: 0.10.0
libtpu: 0.0.40
codegen_flags: <defaults>
</compile_context>

<pallas_src>
import math

import jax
import jax.numpy as jnp
from jax.experimental import pallas as pl
from jax.experimental.pallas import tpu as pltpu

LANE = 128
SUBLANE = 8


def _rmsnorm_kernel(x_ref, scale_ref, o_ref):
    # x_ref: (1, C, ts, 128)   scale_ref: (1, C, 1, 1) holding g * sqrt(C)
    xf = x_ref[...].astype(jnp.float32)
    # Channel reduction stays on the VALU (vector adds across vregs).
    sumsq = jnp.sum(xf * xf, axis=1, keepdims=True)            # (1, 1, ts, 128)
    # F.normalize(dim=1, eps=1e-12): x / max(||x||, 1e-12)
    #   == x * rsqrt(max(sumsq, 1e-24))   (clamp the *squared* norm)
    inv = jax.lax.rsqrt(jnp.maximum(sumsq, 1e-24))             # EUP slot, ~free
    scale = scale_ref[...].astype(jnp.float32)                 # (1, C, 1, 1)
    # Re-read x for the normalize+scale step instead of keeping the f32 copy
    # bound across the whole body (lower live vreg / VMEM-scratch pressure,
    # matters most for bf16 inputs under v7x's smaller VMEM).
    o_ref[...] = (x_ref[...].astype(jnp.float32) * inv * scale).astype(o_ref.dtype)


def _vmem_capacity_bytes():
    """Physical VMEM of the current generation; safe fallback if unqueryable."""
    try:
        info = pltpu.get_tpu_info()
        cap = int(getattr(info, "vmem_capacity_bytes", 0))
        if cap > 0:
            return cap
    except Exception:
        pass
    return 64 * 1024 * 1024   # v7x-sized fallback -> safe on every generation


def rmsnorm(x, g):
    """x: [B, C, H, W] (NCHW), g: [1, C, 1, 1]. Returns [B, C, H, W]."""
    B, C, H, W = x.shape
    HW = H * W
    itemsize = jnp.dtype(x.dtype).itemsize

    # ---- lane-dense layout: (B, C, S, 128) ----------------------------------
    s_rows = pl.cdiv(HW, LANE)             # number of 128-lane spatial rows
    HW_pad = s_rows * LANE                 # == HW whenever HW % 128 == 0

    # ---- generation-aware VMEM budgeting ------------------------------------
    vmem_cap = _vmem_capacity_bytes()
    budget = (vmem_cap * 5) // 8           # ~40 MiB on v7x, ~80 MiB on v5e/v6e
    vmem_limit = (vmem_cap * 3) // 4       # scoped limit handed to Mosaic

    # The (1, C, 1, 1) scale block pads its last two dims to (8, 128) per
    # channel in VMEM and is double-buffered: C * 8 KiB total.
    scale_bytes = 2 * C * SUBLANE * LANE * 4
    row_bytes = C * LANE * itemsize        # one 128-lane row across all channels
    # x-in + out, each double-buffered -> 4 block-sized buffers in flight.
    max_ts = max(1, (budget - scale_bytes) // (4 * row_bytes))

    # Sublane packing of the dtype: f32 -> 8, bf16 -> 16, int8/fp8 -> 32.
    sub = SUBLANE * max(1, 4 // itemsize)

    # ---- pick the spatial tile ----------------------------------------------
    if s_rows <= max_ts:
        ts = s_rows                        # full spatial extent in one block
        if B == 1 and s_rows > sub:
            # Keep the grid at >= 2 programs so both v7x TensorCores get work.
            ts = max(sub, ((pl.cdiv(s_rows, 2) + sub - 1) // sub) * sub)
    else:
        ts = max(sub, (max_ts // sub) * sub)
    ts = min(ts, s_rows)
    num_s_tiles = pl.cdiv(s_rows, ts)      # ragged last block masked by Pallas

    # ---- reshape (pad only when H*W is not already a multiple of 128) -------
    x3 = x.reshape(B, C, HW)
    if HW_pad != HW:
        x3 = jnp.pad(x3, ((0, 0), (0, 0), (0, HW_pad - HW)))
    x4 = x3.reshape(B, C, s_rows, LANE)

    # Fold the constant once on the tiny per-channel tensor.
    scale = g.reshape(1, C, 1, 1).astype(jnp.float32) * math.sqrt(C)

    out4 = pl.pallas_call(
        _rmsnorm_kernel,
        out_shape=jax.ShapeDtypeStruct((B, C, s_rows, LANE), x.dtype),
        grid_spec=pltpu.PrefetchScalarGridSpec(
            num_scalar_prefetch=0,
            grid=(B, num_s_tiles),
            in_specs=[
                pl.BlockSpec((1, C, ts, LANE), lambda b, s: (b, 0, s, 0)),
                pl.BlockSpec((1, C, 1, 1), lambda b, s: (0, 0, 0, 0)),
            ],
            out_specs=pl.BlockSpec((1, C, ts, LANE), lambda b, s: (b, 0, s, 0)),
        ),
        compiler_params=pltpu.CompilerParams(
            # No cross-tile reduction -> both axes parallel (lets v7x's two
            # TensorCores split the grid; harmless on v5e/v6e).
            dimension_semantics=("parallel", "parallel"),
            vmem_limit_bytes=int(vmem_limit),
        ),
    )(x4, scale)

    if HW_pad != HW:
        return out4.reshape(B, C, HW_pad)[:, :, :HW].reshape(B, C, H, W)
    return out4.reshape(B, C, H, W)


if __name__ == "__main__":
    key = jax.random.PRNGKey(0)
    B, C, H, W = 2, 4, 16, 16

    x = jax.random.normal(key, (B, C, H, W), dtype=jnp.float32)
    # nn.Parameter(torch.ones(1, dim, 1, 1)) -> deterministic ones init
    g = jnp.ones((1, C, 1, 1), dtype=jnp.float32)

    out = jax.block_until_ready(rmsnorm(x, g))

    # Pure-JAX reference (F.normalize semantics, eps=1e-12)
    norm = jnp.sqrt(jnp.sum(x * x, axis=1, keepdims=True))
    ref = x / jnp.maximum(norm, 1e-12) * g * (C ** 0.5)
    assert out.shape == x.shape
    assert jnp.allclose(out, ref, atol=1e-5, rtol=1e-5), "mismatch vs reference"

    print("KERNEL_OK")
</pallas_src>

<mosaic_0001>
module attributes {stable_mosaic.version = 11 : i64} {
  func.func @_rmsnorm_kernel(%arg0: i32, %arg1: i32, %arg2: memref<1x4x2x128xf32, #tpu.memory_space<vmem>>, %arg3: memref<1x4x1x1xf32, #tpu.memory_space<vmem>>, %arg4: memref<1x4x2x128xf32, #tpu.memory_space<vmem>>) attributes {dimension_semantics = [#tpu.dimension_semantics<parallel>, #tpu.dimension_semantics<parallel>], iteration_bounds = array<i64: 2, 1>, scalar_prefetch = 0 : i64, scratch_operands = 0 : i64, tpu.core_type = #tpu.core_type<tc>, window_params = [{transform_indices = @transform_0, window_bounds = array<i64: 1, 4, 2, 128>}, {pipeline_mode = #tpu.pipeline_mode<synchronous>, transform_indices = @transform_1, window_bounds = array<i64: 1, 4, 1, 1>}, {transform_indices = @transform_2, window_bounds = array<i64: 1, 4, 2, 128>}]} {
    %c0 = arith.constant 0 : index
    %c0_0 = arith.constant 0 : index
    %c0_1 = arith.constant 0 : index
    %c0_2 = arith.constant 0 : index
    %0 = vector.load %arg2[%c0, %c0_0, %c0_1, %c0_2] : memref<1x4x2x128xf32, #tpu.memory_space<vmem>>, vector<1x4x2x128xf32>
    %1 = arith.mulf %0, %0 : vector<1x4x2x128xf32>
    %cst = arith.constant dense<0.000000e+00> : vector<1x2x128xf32>
    %2 = vector.multi_reduction <add>, %1, %cst [1] : vector<1x4x2x128xf32> to vector<1x2x128xf32>
    %3 = vector.shape_cast %2 : vector<1x2x128xf32> to vector<1x1x2x128xf32>
    %cst_3 = arith.constant 1.000000e-24 : f32
    %4 = vector.broadcast %cst_3 : f32 to vector<1x1x2x128xf32>
    %5 = arith.maximumf %3, %4 : vector<1x1x2x128xf32>
    %6 = math.rsqrt %5 : vector<1x1x2x128xf32>
    %c0_4 = arith.constant 0 : index
    %c0_5 = arith.constant 0 : index
    %c0_6 = arith.constant 0 : index
    %c0_7 = arith.constant 0 : index
    %7 = vector.load %arg3[%c0_4, %c0_5, %c0_6, %c0_7] : memref<1x4x1x1xf32, #tpu.memory_space<vmem>>, vector<1x4x1x1xf32>
    %c0_8 = arith.constant 0 : index
    %c0_9 = arith.constant 0 : index
    %c0_10 = arith.constant 0 : index
    %c0_11 = arith.constant 0 : index
    %8 = vector.load %arg2[%c0_8, %c0_9, %c0_10, %c0_11] : memref<1x4x2x128xf32, #tpu.memory_space<vmem>>, vector<1x4x2x128xf32>
    %9 = vector.broadcast %6 : vector<1x1x2x128xf32> to vector<1x4x2x128xf32>
    %10 = arith.mulf %8, %9 : vector<1x4x2x128xf32>
    %11 = vector.broadcast %7 : vector<1x4x1x1xf32> to vector<1x4x2x128xf32>
    %12 = arith.mulf %10, %11 : vector<1x4x2x128xf32>
    %c0_12 = arith.constant 0 : index
    %c0_13 = arith.constant 0 : index
    %c0_14 = arith.constant 0 : index
    %c0_15 = arith.constant 0 : index
    %13 = vector.load %arg4[%c0_12, %c0_13, %c0_14, %c0_15] : memref<1x4x2x128xf32, #tpu.memory_space<vmem>>, vector<1x4x2x128xf32>
    tpu.vector_store %arg4[%c0_12, %c0_13, %c0_14, %c0_15], %12 {strides = array<i32>} : memref<1x4x2x128xf32, #tpu.memory_space<vmem>>, vector<1x4x2x128xf32>,
    return
  }
  func.func @transform_0(%arg0: i32, %arg1: i32) -> (i32, i32, i32, i32) {
    %c0_i32 = arith.constant 0 : i32
    %c0_i32_0 = arith.constant 0 : i32
    %c0_i32_1 = arith.constant 0 : i32
    return %arg0, %c0_i32, %arg1, %c0_i32_0 : i32, i32, i32, i32
  }
  func.func @transform_1(%arg0: i32, %arg1: i32) -> (i32, i32, i32, i32) {
    %c0_i32 = arith.constant 0 : i32
    %c0_i32_0 = arith.constant 0 : i32
    %c0_i32_1 = arith.constant 0 : i32
    %c0_i32_2 = arith.constant 0 : i32
    %c0_i32_3 = arith.constant 0 : i32
    return %c0_i32, %c0_i32_0, %c0_i32_1, %c0_i32_2 : i32, i32, i32, i32
  }
  func.func @transform_2(%arg0: i32, %arg1: i32) -> (i32, i32, i32, i32) {
    %c0_i32 = arith.constant 0 : i32
    %c0_i32_0 = arith.constant 0 : i32
    %c0_i32_1 = arith.constant 0 : i32
    return %arg0, %c0_i32, %arg1, %c0_i32_0 : i32, i32, i32, i32
  }
}

</mosaic_0001>

<bundles_post_ra>
// kernel: tpu_custom_call.1
= control target key start
LH: loop header
LB: loop body
LE: loop exit
PB: predicated region body
PF: predicated region fallthrough
CT: control target
= control target key end

     0   :  { %7 = vsyncpa [#allocation3], 0  ;;  %s735_s0 = inlined_call_operand.hbm [shape: f32[2,4,2,128], index: 0, kind: input, shape index: {}]   ;;  %s736_s1 = inlined_call_operand.vmem [shape: f32[1,4,1,1], index: 1, kind: input, shape index: {}]   ;;  %s737_s2 = inlined_call_operand.hbm [shape: f32[2,4,2,128], index: 2, kind: output, shape index: {}]  }
   0x1   :  { %9 = vsyncpa [#allocation3 + $0x1], 0 }
   0x2   :  { %10 = vsyncpa [#allocation4], 0 }
   0x3   :  { %12 = vsyncpa [#allocation4 + $0x1], 0  ;;  %s573_s9 = smov 0   ;;  %s575_s10 = smov 0  }
   0x4   :  { %s577_s11 = smov 0   ;;  %s579_s12 = smov 0  }
   0x5   :  { %s581_s13 = smov 0   ;;  %s583_s14 = smov 0  }
   0x6 LB: > { %s349_s15 = sadd.s32 4294967295, %s549_s14   ;;  %s350_s16 = sadd.s32 4294967294, %s549_s14   ;;  %s549_s14 = sphi %s583_s14, %s18_s14   ;;  %s545_s13 = sphi %s581_s13, %s748_s13   ;;  %s541_s12 = sphi %s579_s12, %s747_s12   ;;  %s537_s11 = sphi %s577_s11, %s746_s11   ;;  %s533_s10 = sphi %s575_s10, %s745_s10   ;;  %s529_s9 = sphi %s573_s9, %s744_s9  }
   0x7   : > { %s30_s17 = sadd.s32 1, %s545_s13  ;;  %s39_s18 = sadd.s32 1, %s537_s11 }
   0x8   : > { %p32_p0 = scmp.ge.s32.totalorder %s30_s17, 2  ;;  %p46_p1 = scmp.ne.s32.totalorder %s537_s11, %s533_s10 }
   0x9   : > { %p47_p2 = scmp.eq.s32.totalorder %s549_s14, 0  ;;  %p52_p3 = scmp.ne.s32.totalorder %s533_s10, %s529_s9 }
   0xa   : > { %s750_s17 = smov (%p32_p0, %s30_s17), 0  ;;  %p53_p5 = scmp.eq.s32.totalorder %s349_s15, 0 }
   0xb   : > { %p614_p4 = por %p47_p2, %p46_p1  ;;  %s34_s20 = ssub.s32 %s545_s13, %s750_s17 }
   0xc   : > { %p99_p6 = scmp.eq.s32.totalorder %s349_s15, 1  ;;  %p37_p7 = scmp.eq.s32.totalorder %s34_s20, 0 }
   0xd   : > { %p620_p8 = por %p53_p5, %p52_p3  ;;  %p105_p10 = scmp.eq.s32.totalorder %s350_s16, 1 }
   0xe   : > { %p624_p9 = por %p99_p6, %p46_p1  ;;  %p382_p13 = scmp.lt.s32.totalorder %s549_s14, 2 }
   0xf   : > { %s629_s23 = scalar_select %p37_p7, %s537_s11, %s39_s18  }
  0x10   : > { %p631_p11 = por %p105_p10, %p52_p3  ;;  %s128_s25 = sand.u32 1, %s537_s11  }
  0x11   : > { %s353_s26 = sshll.u32 %s128_s25, 3  ;;  %s368_s27 = sshll.u32 %s545_s13, 7 }
  0x12   : > { %s139_s30 = scalar_lea.hbm %s735_s0, %s368_s27  ;;  %s132_s3 = scalar_lea.vmem [#allocation2], %s353_s26 }
  0x13   : > { %s140_s4 = sshll.u32 %s132_s3, 4  ;;  %p644_p0 = pnand %p382_p13, %p614_p4  ;;  %s141_s4 = int_to_ptr.vmem [resolvable:$true] %s140_s4 }
  0x14   : > { %p356_p1 = scmp.ge.s32.totalorder %s549_s14, 1  ;;  %s129_s6 = scalar_lea.sflag [#allocation3], %s128_s25 }
  0x15   : > { %p443_p2 = pneg %p644_p0  ;;  %s454_s7 = scalar_lea.vmem %s141_s4, 128 }
  0x16   : > { %p455_p3 = scmp.ne.s32.totalorder %s141_s4, %s454_s7  ;;  %s551_s8 = smov [#allocation2]  }
  0x17   : > { %s459_s15 = sshll.u32 %s551_s8, 4  ;;  %s460_s15 = int_to_ptr.vmem [resolvable:$false] %s459_s15 }
  0x18   : > { %p457_p5 = pnand %p455_p3, %p443_p2  ;;  %s461_s16 = scalar_lea.vmem %s460_s15, 256 }
  0x19   : > { %p462_p7 = scmp.lt.s32.totalorder %s141_s4, %s460_s15  ;;  %p463_p10 = scmp.lt.s32.totalorder %s461_s16, %s454_s7 }
  0x1a   : > { %p458_p6 = pneg %p457_p5 }
  0x1b   : > { %p464_p12 = por %p463_p10, %p462_p7 }
  0x1d   : > { %p465_p4 = pnand %p464_p12, %p458_p6 }
  0x1f   : > { %468 = shalt.err (!%p465_p4)
}
  0x20   : > { %s552_s18 = smov 32   ;;  %s553_s19 = smov 2  }
  0x21   : > { %377 = dma.hbm_to_vmem [thread:$0]  (!%p644_p0), %s139_s30, 128, %s141_s4, %s129_s6, %s552_s18, %s552_s18, %s553_s19  }
  0x22   : > { %p148_p13 = scmp.lt.s32.totalorder %s549_s14, 3 }
  0x24   : > { %p149_p2 = pnand %p356_p1, %p148_p13 }
  0x25   : > { %s657_s20 = sand.u32 (!%p149_p2), 1, %s533_s10  }
  0x26   : > { %152 = sbr.rel (%p149_p2) target bundleno = 190 (0xbe), region = 28  ;;  %s357_s25 = sshll.u32 (!%p149_p2), %s657_s20, 3 }
  0x27   : > { %s155_s26 = scalar_lea.sflag (!%p149_p2), [#allocation3], %s657_s20  ;;  %s158_s27 = scalar_lea.vmem (!%p149_p2), [#allocation2], %s357_s25 }
  0x2b   : > { %520 = dma.done.wait (%p620_p8), %s155_s26, 128  }
  0x2c   : > { %522 = vsyncadd (%p620_p8), %s155_s26, 4294967168  ;;  %v554_v0 = vmov 0   ;;  %v361_v1 = vld [vmem:[%s736_s1 + $0x2] ss:$0 sm:$0xff]  ;;  %v359_v2 = vld [vmem:[%s736_s1] ss:$0 sm:$0xff] }
  0x2d   : > { %438 = vset.pattern.permute.xlu1 %v554_v0  ;;  %437 = vset.pattern.permute.xlu0 %v554_v0  ;;  %v362_v3 = vld [vmem:[%s736_s1 + $0x3] ss:$0 sm:$0xff]  ;;  %v360_v4 = vld [vmem:[%s736_s1 + $0x1] ss:$0 sm:$0xff]  ;;  %vm187_vm0 = vcmask 1041408   ;;  %s178_s7 = scalar_lea.vmem [#allocation5], %s357_s25 }
  0x2e   : > { %234 = vperm.xlu1 %438, %v361_v1   ;;  %226 = vperm.xlu0 %437, %v359_v2   ;;  %v179_v5 = vld [vmem:[%s158_s27] sm:$0x3]  ;;  %v180_v6 = vld [vmem:[%s158_s27 + $0x2] sm:$0x3]  ;;  %v181_v9 = vld [vmem:[%s158_s27 + $0x4] sm:$0x3] }
  0x2f   : > { %v183_v7 = vmul.f32 %v179_v5, %v179_v5  ;;  %v184_v8 = vmul.f32 %v180_v6, %v180_v6  ;;  %v185_v10 = vmul.f32 %v181_v9, %v181_v9  ;;  %v182_v13 = vld [vmem:[%s158_s27 + $0x6] sm:$0x3]  ;;  %s264_s8 = sshll.u32 %s178_s7, 4  ;;  %s369_s15 = sshll.u32 %s541_s12, 7  ;;  %s682_s8 = int_to_ptr.vmem [resolvable:$true] %s264_s8 }
  0x30   : > { %v186_v15 = vmul.f32 %v182_v13, %v182_v13  ;;  %s687_s19 = scalar_lea.hbm %s737_s2, %s369_s15  ;;  %s250_s25 = scalar_lea.sflag [#allocation4], %s657_s20 }
  0x31   : > { %v188_v11 = vsel %vm187_vm0, %v183_v7, 0.0  ;;  %v189_v12 = vsel %vm187_vm0, %v184_v8, 0.0  ;;  %v191_v16 = vsel %vm187_vm0, %v185_v10, 0.0  ;;  %s469_s12 = scalar_lea.vmem %s682_s8, 128  ;;  %s555_s26 = smov [#allocation5]  }
  0x32   : > { %238 = vperm.xlu1 %438, %v362_v3   ;;  %230 = vperm.xlu0 %437, %v360_v4   ;;  %v190_v14 = vadd.f32 %v189_v12, %v188_v11  ;;  %v193_v18 = vsel %vm187_vm0, %v186_v15, 0.0  ;;  %p470_p8 = scmp.ne.s32.totalorder %s682_s8, %s469_s12  ;;  %s473_s27 = sshll.u32 %s555_s26, 4  ;;  %s474_s27 = int_to_ptr.vmem [resolvable:$false] %s473_s27 }
  0x33   : > { %s475_s28 = scalar_lea.vmem %s474_s27, 256  ;;  %p476_p1 = scmp.lt.s32.totalorder %s682_s8, %s474_s27 }
  0x34   : > { %v192_v17 = vadd.f32 %v191_v16, %v190_v14  ;;  %p471_p12 = pnand %p470_p8, %p624_p9  ;;  %p477_p3 = scmp.lt.s32.totalorder %s475_s28, %s469_s12 }
  0x36   : > { %v194_v19 = vadd.f32 %v193_v18, %v192_v17  ;;  %p472_p0 = pneg %p471_p12  ;;  %p478_p5 = por %p477_p3, %p476_p1 }
  0x38   : > { %v195_v20 = vmax.f32 %v194_v19, 1e-24  ;;  %p479_p6 = pnand %p478_p5, %p472_p0 }
  0x3a   : > { %439 = vrsqrt.f32 %v195_v20 }
  0x47   : > { %v440_v21 = vpop.eup %439 }
  0x48   : > { %v203_v22 = vmul.f32 %v440_v21, %v181_v9  ;;  %v201_v23 = vmul.f32 %v440_v21, %v179_v5  ;;  %v204_v28 = vmul.f32 %v440_v21, %v182_v13  ;;  %v202_v29 = vmul.f32 %v440_v21, %v180_v6 }
  0xa9   : > { %v235_v24 = vpop.permute.xlu1 %234  ;;  %v227_v25 = vpop.permute.xlu0 %226 }
  0xaa   : > { %v243_v26 = vmul.f32 %v235_v24, %v203_v22  ;;  %v241_v27 = vmul.f32 %v227_v25, %v201_v23 }
  0xac   : > { %247 = vst [vmem:[%s178_s7 + $0x4] sm:$0x3] %v243_v26  ;;  %245 = vst [vmem:[%s178_s7] sm:$0x3] %v241_v27 }
  0xad   : > { %v239_v30 = vpop.permute.xlu1 %238  ;;  %v231_v31 = vpop.permute.xlu0 %230 }
  0xae   : > { %v244_v32 = vmul.f32 %v239_v30, %v204_v28  ;;  %v242_v33 = vmul.f32 %v231_v31, %v202_v29 }
  0xb0   : > { %248 = vst [vmem:[%s178_s7 + $0x6] sm:$0x3] %v244_v32  ;;  %246 = vst [vmem:[%s178_s7 + $0x2] sm:$0x3] %v242_v33 }
  0xb1   : > { %482 = shalt.err (!%p479_p6)
}
  0xb2   : > { %s483_s29 = scalar_lea.hbm %s687_s19, 128  ;;  %s487_s4 = scalar_lea.hbm %s737_s2, 256 }
  0xb3   : > { %p484_p7 = scmp.ne.s32.totalorder %s687_s19, %s483_s29  ;;  %p488_p13 = scmp.lt.s32.totalorder %s687_s19, %s737_s2 }
  0xb4   : > { %p489_p2 = scmp.lt.s32.totalorder %s487_s4, %s483_s29 }
  0xb5   : > { %p485_p10 = pnand %p484_p7, %p624_p9 }
  0xb6   : > { %p490_p8 = por %p489_p2, %p488_p13 }
  0xb7   : > { %p486_p4 = pneg %p485_p10 }
  0xb9   : > { %p491_p12 = pnand %p490_p8, %p486_p4 }
  0xbb   : > { %494 = shalt.err (!%p491_p12)
}
  0xbc   : > { %s556_s21 = smov 32   ;;  %s557_s7 = smov 2  }
  0xbd   : > { %372 = dma.vmem_to_hbm [thread:$0]  (%p624_p9), %s682_s8, 128, %s687_s19, %s250_s25, %s556_s21, %s556_s21, %s557_s7  }
  0xbe PF: > { %s279_s15 = sand.u32 1, %s529_s9   ;;  %p743_p0 = scmp.ge.s32.totalorder %s549_s14, 2 }
  0xbf   : > { %s280_s16 = scalar_lea.sflag [#allocation4], %s279_s15 }
  0xc0   : > { %p379_p1 = pnand %p743_p0, %p631_p11 }
  0xc2   : > { %p380_p3 = pneg %p379_p1 }
  0xc4   : > { %524 = dma.done.wait (%p380_p3), %s280_s16, 128  }
  0xc5   : > { %526 = vsyncadd (%p380_p3), %s280_s16, 4294967168  ;;  %s18_s14 = sadd.s32 1, %s549_s14   ;;  %s744_s9 = smov %s533_s10 }
  0xc6   : > { %p15_p5 = scmp.ge.s32.totalorder %s18_s14, 4   ;;  %s745_s10 = smov %s537_s11 }
  0xc7   : > { %s746_s11 = smov %s629_s23  ;;  %s747_s12 = smov %s545_s13 }
  0xc8   : > { %s748_s13 = smov %s750_s17  ;;  %17 = sbr.rel (!%p15_p5) target bundleno = 6 (0x6), region = 73 }
  0xcd   :  { %285 = vsyncpa [#allocation3], 1 }
  0xce   :  { %287 = vsyncpa [#allocation3 + $0x1], 1 }
  0xcf   :  { %288 = vsyncpa [#allocation4], 1 }
  0xd0   :  { %290 = vsyncpa [#allocation4 + $0x1], 1 }

</bundles_post_ra>
